<compile_context>
chip_gen: v7x
topology: tpu7x:2x2x1
jax: 0.10.0
libtpu: 0.0.40
codegen_flags: <defaults>
</compile_context>

<pallas_src>
import functools

import jax
import jax.numpy as jnp
from jax.experimental import pallas as pl
from jax.experimental.pallas import tpu as pltpu


def _loss_kernel(mask_ref, feat_ref, gt_ref, out_ref, *, eps_sq):
    # mask_ref: (B, 2) int32 in SMEM; [:, 0] = misclassified, [:, 1] = correctly classified
    # feat_ref / gt_ref: (1, C, T_HW) VMEM tiles of the current (batch, spatial tile)
    # out_ref: (1, 1, T_HW) lane-dense partial sums, resident across the inner tile axis
    b = pl.program_id(0)
    i = pl.program_id(2)

    @pl.when(i == 0)
    def _():
        out_ref[...] = jnp.zeros_like(out_ref)

    inc = mask_ref[b, 0]   # weight for the L2-normalized-features term
    cor = mask_ref[b, 1]   # weight for the gt-features term

    # Compute is gated per input: when the mask is 0 the corresponding VMEM block
    # is a stale tile-0 reuse (its per-tile DMA was skipped by the index_map), so
    # we do not square / sublane-reduce it (saves VPU+XLU work, avoids 0*NaN).
    @pl.when(inc == 1)
    def _():
        f = feat_ref[...].astype(jnp.float32)                 # (1, C, T)
        f_ssq = jnp.sum(f * f, axis=1)                        # (1, T) sublane reduce
        # sum_C F.normalize(f, p=2, dim=1)^2 == ssq / max(ssq, eps^2)  (exact identity)
        out_ref[...] += (f_ssq / jnp.maximum(f_ssq, eps_sq))[:, None, :]

    @pl.when(cor == 1)
    def _():
        g = gt_ref[...].astype(jnp.float32)                   # (1, C, T)
        out_ref[...] += jnp.sum(g * g, axis=1)[:, None, :]


def _vmem_budgets():
    """Generation-aware (per_block_budget_bytes, vmem_limit_bytes)."""
    vmem_cap = 64 * 1024 * 1024            # conservative default (v7x: 64 MiB / TC)
    try:
        info = pltpu.get_tpu_info()
        cap = getattr(info, "vmem_capacity_bytes", None)
        if cap:
            vmem_cap = int(cap)
    except Exception:
        pass
    if vmem_cap >= 128 * 1024 * 1024:      # v5e / v6e: 128 MiB physical VMEM
        return 8 * 1024 * 1024, 64 * 1024 * 1024
    return 4 * 1024 * 1024, 48 * 1024 * 1024   # v7x: 64 MiB per TensorCore


def _pick_hw_tile(hw_pad, c, itemsize, per_block_budget):
    """Largest multiple of 128 dividing hw_pad with one (C, tile) input block <= budget."""
    best = 128
    t = 128
    while t <= hw_pad:
        if hw_pad % t == 0 and c * t * itemsize <= per_block_budget:
            best = t
        t += 128
    return best


def reconstruction_contrastive_loss(features, gt_features, pred, y,
                                    distance="l2", _max_hw_tile=None):
    """JAX/Pallas equivalent of ReconstructionContrastiveLoss.forward (NCHW inputs)."""
    if distance != "l2":
        # TODO(synk): 'l1' and 'max' distance variants are not implemented.
        raise NotImplementedError("Only the default distance='l2' is implemented.")

    B, C, H, W = features.shape
    HW = H * W

    # --- glue: per-batch correctness masks from the tiny (B, num_classes) logits ---
    argmax = jnp.argmax(pred, axis=1).astype(y.dtype)
    valid = (y == 0) | (y == 1)
    incorrect = (argmax != y) & valid          # == incorrect_0 | incorrect_1
    correct = (argmax == y) & valid            # == correct_0   | correct_1
    masks = jnp.stack([incorrect, correct], axis=1).astype(jnp.int32)   # (B, 2)

    feats = features.reshape(B, C, HW)
    gts = gt_features.reshape(B, C, HW)

    # Pad the spatial (lane) axis up to a multiple of 128.  Zero padding is exact:
    # padded positions have ssq == 0, so both terms contribute exactly 0 there.
    hw_pad = ((HW + 127) // 128) * 128
    if hw_pad != HW:
        pad_cfg = ((0, 0), (0, 0), (0, hw_pad - HW))
        feats = jnp.pad(feats, pad_cfg)
        gts = jnp.pad(gts, pad_cfg)

    itemsize = jnp.dtype(feats.dtype).itemsize
    per_block_budget, vmem_limit = _vmem_budgets()
    t_hw = _pick_hw_tile(hw_pad, C, itemsize, per_block_budget)
    if _max_hw_tile is not None:               # testing knob: force multi-tile grids
        t_hw = min(t_hw, _max_hw_tile)
    n_t = hw_pad // t_hw

    # v7x megacore: the batch axis is the natural "parallel" axis; when it cannot
    # feed both TensorCores (B odd / B == 1), split the spatial tiles into an outer
    # parallel axis so both cores stream HBM.  No effect on single-TC v5e/v6e.
    n_outer = 2 if (B % 2 == 1 and n_t % 2 == 0) else 1
    n_inner = n_t // n_outer

    # eps^2 for F.normalize's eps=1e-12; plain Python float -> inlined literal.
    kernel = functools.partial(_loss_kernel, eps_sq=1e-24)

    # HBM traffic after mask-gating: the needed input is streamed in full, the
    # un-needed one is fetched exactly once per batch (constant block index).
    bytes_accessed = (B * C * hw_pad * itemsize            # streamed input
                      + B * C * t_hw * itemsize            # single tile of skipped input
                      + B * n_outer * t_hw * 4)            # partial-sum output
    cost = pl.CostEstimate(flops=3 * B * C * hw_pad, transcendentals=0,
                           bytes_accessed=bytes_accessed)

    # TODO(synk): if xprof shows exposed DMA at batch boundaries, add
    # pipeline_mode=pl.Buffered(3) on the input BlockSpecs (only worthwhile while
    # the block budget leaves VMEM headroom).
    partial_sums = pl.pallas_call(
        kernel,
        out_shape=jax.ShapeDtypeStruct((B, n_outer, t_hw), jnp.float32),
        grid_spec=pltpu.PrefetchScalarGridSpec(
            num_scalar_prefetch=1,             # masks -> SMEM, passed first to kernel/index_maps
            grid=(B, n_outer, n_inner),        # reduction (inner spatial tiles) axis last
            in_specs=[
                # Mask-gated DMA skip: when the per-batch mask is 0 the block index
                # is constant across (o, i), so the un-needed array is fetched only
                # once per batch instead of n_t times (~2x less HBM traffic).
                pl.BlockSpec((1, C, t_hw),
                             lambda b, o, i, m: (b, 0, (o * n_inner + i) * m[b, 0])),
                pl.BlockSpec((1, C, t_hw),
                             lambda b, o, i, m: (b, 0, (o * n_inner + i) * m[b, 1])),
            ],
            out_specs=pl.BlockSpec((1, 1, t_hw), lambda b, o, i, m: (b, o, 0)),
        ),
        compiler_params=pltpu.CompilerParams(
            dimension_semantics=("parallel", "parallel", "arbitrary"),
            vmem_limit_bytes=vmem_limit,
        ),
        cost_estimate=cost,
    )(masks, feats, gts)

    # Single cross-lane reduce + mean divisors (1/(C*HW) spatial mean, 1/B batch
    # mean), applied once wrapper-side.  Padded lanes contribute exactly 0.
    return jnp.sum(partial_sums) / jnp.float32(B * C * HW)


def _reference(features, gt_features, pred, y):
    """Pure-JAX reference mirroring the PyTorch forward (distance='l2')."""
    f = features.astype(jnp.float32)
    nrm = jnp.sqrt(jnp.sum(f * f, axis=1, keepdims=True))
    fn = f / jnp.maximum(nrm, 1e-12)
    g = gt_features.astype(jnp.float32)
    argmax = jnp.argmax(pred, axis=1).astype(y.dtype)
    c0 = ((argmax == y) & (y == 0)).astype(jnp.float32)[:, None, None, None]
    c1 = ((argmax == y) & (y == 1)).astype(jnp.float32)[:, None, None, None]
    i0 = ((argmax != y) & (y == 0)).astype(jnp.float32)[:, None, None, None]
    i1 = ((argmax != y) & (y == 1)).astype(jnp.float32)[:, None, None, None]
    d0 = jnp.mean(jnp.square(fn * i0 - g * c0), axis=(1, 2, 3))
    d1 = jnp.mean(jnp.square(fn * i1 - g * c1), axis=(1, 2, 3))
    return jnp.mean(d0 + d1)


if __name__ == "__main__":
    def run_case(B, C, H, W, pred, y, key, max_hw_tile=None):
        k1, k2 = jax.random.split(key)
        features = jax.random.normal(k1, (B, C, H, W), dtype=jnp.float32)
        gt_features = jax.random.normal(k2, (B, C, H, W), dtype=jnp.float32)
        loss = jax.block_until_ready(
            reconstruction_contrastive_loss(features, gt_features, pred, y,
                                            _max_hw_tile=max_hw_tile))
        ref = jax.block_until_ready(_reference(features, gt_features, pred, y))
        assert jnp.allclose(loss, ref, atol=1e-5, rtol=1e-5), (loss, ref)

    k0, k1, k2, k3 = jax.random.split(jax.random.PRNGKey(0), 4)

    # Case 1: both kernel branches exercised deterministically
    # (sample 0: correct class 0 -> gt term; sample 1: misclassified -> feature term).
    pred1 = jnp.array([[2.0, -1.0], [3.0, -2.0]], dtype=jnp.float32)
    y1 = jnp.array([0, 1], dtype=jnp.int32)
    run_case(2, 4, 16, 16, pred1, y1, k0)

    # Case 2: odd B -> spatial tiles split across the outer parallel axis (v7x
    # megacore path) + multi-tile accumulation with mask-gated DMA skip.
    pred2 = jax.random.normal(k1, (1, 2), dtype=jnp.float32)
    y2 = jax.random.randint(k2, (1,), 0, 2, dtype=jnp.int32)
    run_case(1, 4, 16, 32, pred2, y2, k3, max_hw_tile=128)

    # Case 3: HW not a multiple of 128 -> wrapper zero-padding path.
    pred3 = jnp.array([[0.5, 1.5], [1.0, -1.0]], dtype=jnp.float32)
    y3 = jnp.array([1, 0], dtype=jnp.int32)
    run_case(2, 4, 7, 7, pred3, y3, jax.random.PRNGKey(7))

    print("KERNEL_OK")
</pallas_src>

<mosaic_0001>
module attributes {stable_mosaic.version = 11 : i64} {
  func.func @_loss_kernel(%arg0: i32, %arg1: i32, %arg2: i32, %arg3: memref<2x2xi32, #tpu.memory_space<smem>>, %arg4: memref<1x4x256xf32, #tpu.memory_space<vmem>>, %arg5: memref<1x4x256xf32, #tpu.memory_space<vmem>>, %arg6: memref<1x1x256xf32, #tpu.memory_space<vmem>>) attributes {dimension_semantics = [#tpu.dimension_semantics<parallel>, #tpu.dimension_semantics<parallel>, #tpu.dimension_semantics<arbitrary>], iteration_bounds = array<i64: 2, 1, 1>, scalar_prefetch = 1 : i64, scratch_operands = 0 : i64, tpu.core_type = #tpu.core_type<tc>, window_params = [{transform_indices = @transform_0, window_bounds = array<i64: 1, 4, 256>}, {transform_indices = @transform_1, window_bounds = array<i64: 1, 4, 256>}, {transform_indices = @transform_2, window_bounds = array<i64: 1, 1, 256>}]} {
    %c0_i32 = arith.constant 0 : i32
    %0 = arith.cmpi eq, %arg2, %c0_i32 : i32
    %1 = arith.extui %0 : i1 to i32
    %c0_i32_0 = arith.constant 0 : i32
    %2 = arith.cmpi ne, %1, %c0_i32_0 : i32
    scf.if %2 {
      %cst = arith.constant 0.000000e+00 : f32
      %13 = vector.broadcast %cst : f32 to vector<1x1x256xf32>
      %c0_4 = arith.constant 0 : index
      %c0_5 = arith.constant 0 : index
      %c0_6 = arith.constant 0 : index
      %14 = vector.load %arg6[%c0_4, %c0_5, %c0_6] : memref<1x1x256xf32, #tpu.memory_space<vmem>>, vector<1x1x256xf32>
      tpu.vector_store %arg6[%c0_4, %c0_5, %c0_6], %13 {strides = array<i32>} : memref<1x1x256xf32, #tpu.memory_space<vmem>>, vector<1x1x256xf32>,
    } else {
    }
    %3 = arith.index_cast %arg0 : i32 to index
    %c0 = arith.constant 0 : index
    %4 = memref.load %arg3[%3, %c0] : memref<2x2xi32, #tpu.memory_space<smem>>
    %5 = arith.index_cast %arg0 : i32 to index
    %c1 = arith.constant 1 : index
    %6 = memref.load %arg3[%5, %c1] : memref<2x2xi32, #tpu.memory_space<smem>>
    %c1_i32 = arith.constant 1 : i32
    %7 = arith.cmpi eq, %4, %c1_i32 : i32
    %8 = arith.extui %7 : i1 to i32
    %c0_i32_1 = arith.constant 0 : i32
    %9 = arith.cmpi ne, %8, %c0_i32_1 : i32
    scf.if %9 {
      %c0_4 = arith.constant 0 : index
      %c0_5 = arith.constant 0 : index
      %c0_6 = arith.constant 0 : index
      %13 = vector.load %arg4[%c0_4, %c0_5, %c0_6] : memref<1x4x256xf32, #tpu.memory_space<vmem>>, vector<1x4x256xf32>
      %14 = arith.mulf %13, %13 : vector<1x4x256xf32>
      %cst = arith.constant dense<0.000000e+00> : vector<1x256xf32>
      %15 = vector.multi_reduction <add>, %14, %cst [1] : vector<1x4x256xf32> to vector<1x256xf32>
      %c0_7 = arith.constant 0 : index
      %c0_8 = arith.constant 0 : index
      %c0_9 = arith.constant 0 : index
      %16 = vector.load %arg6[%c0_7, %c0_8, %c0_9] : memref<1x1x256xf32, #tpu.memory_space<vmem>>, vector<1x1x256xf32>
      %cst_10 = arith.constant 1.000000e-24 : f32
      %17 = vector.broadcast %cst_10 : f32 to vector<1x256xf32>
      %18 = arith.maximumf %15, %17 : vector<1x256xf32>
      %19 = arith.divf %15, %18 : vector<1x256xf32>
      %20 = vector.shape_cast %19 : vector<1x256xf32> to vector<1x1x256xf32>
      %21 = arith.addf %16, %20 : vector<1x1x256xf32>
      %c0_11 = arith.constant 0 : index
      %c0_12 = arith.constant 0 : index
      %c0_13 = arith.constant 0 : index
      %22 = vector.load %arg6[%c0_11, %c0_12, %c0_13] : memref<1x1x256xf32, #tpu.memory_space<vmem>>, vector<1x1x256xf32>
      tpu.vector_store %arg6[%c0_11, %c0_12, %c0_13], %21 {strides = array<i32>} : memref<1x1x256xf32, #tpu.memory_space<vmem>>, vector<1x1x256xf32>,
    } else {
    }
    %c1_i32_2 = arith.constant 1 : i32
    %10 = arith.cmpi eq, %6, %c1_i32_2 : i32
    %11 = arith.extui %10 : i1 to i32
    %c0_i32_3 = arith.constant 0 : i32
    %12 = arith.cmpi ne, %11, %c0_i32_3 : i32
    scf.if %12 {
      %c0_4 = arith.constant 0 : index
      %c0_5 = arith.constant 0 : index
      %c0_6 = arith.constant 0 : index
      %13 = vector.load %arg5[%c0_4, %c0_5, %c0_6] : memref<1x4x256xf32, #tpu.memory_space<vmem>>, vector<1x4x256xf32>
      %c0_7 = arith.constant 0 : index
      %c0_8 = arith.constant 0 : index
      %c0_9 = arith.constant 0 : index
      %14 = vector.load %arg6[%c0_7, %c0_8, %c0_9] : memref<1x1x256xf32, #tpu.memory_space<vmem>>, vector<1x1x256xf32>
      %15 = arith.mulf %13, %13 : vector<1x4x256xf32>
      %cst = arith.constant dense<0.000000e+00> : vector<1x256xf32>
      %16 = vector.multi_reduction <add>, %15, %cst [1] : vector<1x4x256xf32> to vector<1x256xf32>
      %17 = vector.shape_cast %16 : vector<1x256xf32> to vector<1x1x256xf32>
      %18 = arith.addf %14, %17 : vector<1x1x256xf32>
      %c0_10 = arith.constant 0 : index
      %c0_11 = arith.constant 0 : index
      %c0_12 = arith.constant 0 : index
      %19 = vector.load %arg6[%c0_10, %c0_11, %c0_12] : memref<1x1x256xf32, #tpu.memory_space<vmem>>, vector<1x1x256xf32>
      tpu.vector_store %arg6[%c0_10, %c0_11, %c0_12], %18 {strides = array<i32>} : memref<1x1x256xf32, #tpu.memory_space<vmem>>, vector<1x1x256xf32>,
    } else {
    }
    return
  }
  func.func @transform_0(%arg0: i32, %arg1: i32, %arg2: i32, %arg3: memref<2x2xi32, #tpu.memory_space<smem>>) -> (i32, i32, i32) {
    %c1_i32 = arith.constant 1 : i32
    %0 = arith.muli %arg1, %c1_i32 : i32
    %1 = arith.addi %0, %arg2 : i32
    %2 = arith.index_cast %arg0 : i32 to index
    %c0 = arith.constant 0 : index
    %3 = memref.load %arg3[%2, %c0] : memref<2x2xi32, #tpu.memory_space<smem>>
    %4 = arith.muli %1, %3 : i32
    %c0_i32 = arith.constant 0 : i32
    %c0_i32_0 = arith.constant 0 : i32
    return %arg0, %c0_i32, %4 : i32, i32, i32
  }
  func.func @transform_1(%arg0: i32, %arg1: i32, %arg2: i32, %arg3: memref<2x2xi32, #tpu.memory_space<smem>>) -> (i32, i32, i32) {
    %c1_i32 = arith.constant 1 : i32
    %0 = arith.muli %arg1, %c1_i32 : i32
    %1 = arith.addi %0, %arg2 : i32
    %2 = arith.index_cast %arg0 : i32 to index
    %c1 = arith.constant 1 : index
    %3 = memref.load %arg3[%2, %c1] : memref<2x2xi32, #tpu.memory_space<smem>>
    %4 = arith.muli %1, %3 : i32
    %c0_i32 = arith.constant 0 : i32
    %c0_i32_0 = arith.constant 0 : i32
    return %arg0, %c0_i32, %4 : i32, i32, i32
  }
  func.func @transform_2(%arg0: i32, %arg1: i32, %arg2: i32, %arg3: memref<2x2xi32, #tpu.memory_space<smem>>) -> (i32, i32, i32) {
    %c0_i32 = arith.constant 0 : i32
    %c0_i32_0 = arith.constant 0 : i32
    return %arg0, %arg1, %c0_i32 : i32, i32, i32
  }
}

</mosaic_0001>

<bundles_post_ra>
// kernel: tpu_custom_call.1
= control target key start
LH: loop header
LB: loop body
LE: loop exit
PB: predicated region body
PF: predicated region fallthrough
CT: control target
= control target key end

     0   :  { %s1065_s0 = inlined_call_operand.hbm [shape: s32[2,2], index: 0, kind: input, shape index: {}]   ;;  %s1066_s1 = inlined_call_operand.hbm [shape: f32[2,4,256], index: 1, kind: input, shape index: {}]   ;;  %s1067_s2 = inlined_call_operand.hbm [shape: f32[2,4,256], index: 2, kind: input, shape index: {}]   ;;  %s1068_s3 = inlined_call_operand.hbm [shape: f32[2,1,256], index: 3, kind: output, shape index: {}]  }
   0x1   :  { %s623_s14 = scalar_lea.hbm %s1065_s0, 32 }
   0x2   :  { %p624_p0 = scmp.ne.s32.totalorder %s1065_s0, %s623_s14  ;;  %p627_p1 = scmp.lt.u32.totalorder %s623_s14, %s1065_s0 }
   0x4   :  { %p629_p2 = pnand %p627_p1, %p624_p0 }
   0x6   :  { %632 = shalt.err (!%p629_p2)  }
   0x7   :  { %s783_s19 = smov [#allocation3]  }
   0x8   :  { %9 = dma.hbm_to_smem %s1065_s0, 32, %s783_s19, [#allocation2] }
   0x9   :  { %745 = dma.done.wait [#allocation2], 32 }
   0xa   :  { %746 = vsyncadd [#allocation2], 4294967264 }
   0xb   :  { %11 = sfence }
   0xc   :  { %12 = vsyncpa [#allocation5], 0 }
   0xd   :  { %14 = vsyncpa [#allocation5 + $0x1], 0 }
   0xe   :  { %15 = vsyncpa [#allocation8], 0 }
   0xf   :  { %17 = vsyncpa [#allocation8 + $0x1], 0 }
  0x10   :  { %18 = vsyncpa [#allocation6], 0 }
  0x11   :  { %20 = vsyncpa [#allocation6 + $0x1], 0  ;;  %s822_s22 = smov 0   ;;  %s824_s23 = smov 0  }
  0x12   :  { %s826_s24 = smov 0   ;;  %s828_s25 = smov 0  }
  0x13   :  { %s830_s26 = smov 0   ;;  %s832_s0 = smov 0  }
  0x14 LB: > { %s517_s27 = sadd.s32 4294967295, %s781_s0   ;;  %s518_s28 = sadd.s32 4294967294, %s781_s0   ;;  %s781_s0 = sphi %s832_s0, %s26_s0   ;;  %s777_s26 = sphi %s830_s26, %s1090_s26   ;;  %s773_s25 = sphi %s828_s25, %s1089_s25   ;;  %s769_s24 = sphi %s826_s24, %s1088_s24   ;;  %s765_s23 = sphi %s824_s23, %s1087_s23   ;;  %s761_s22 = sphi %s822_s22, %s1086_s22  }
  0x15   : > { %s45_s29 = sadd.s32 1, %s777_s26  ;;  %s62_s30 = sadd.s32 1, %s769_s24 }
  0x16   : > { %p47_p3 = scmp.ge.s32.totalorder %s45_s29, 2  ;;  %p69_p4 = scmp.ne.s32.totalorder %s769_s24, %s765_s23 }
  0x17   : > { %p70_p5 = scmp.eq.s32.totalorder %s781_s0, 0  ;;  %p75_p6 = scmp.ne.s32.totalorder %s765_s23, %s761_s22 }
  0x18   : > { %s1092_s29 = smov (%p47_p3, %s45_s29), 0  ;;  %p76_p8 = scmp.eq.s32.totalorder %s517_s27, 0 }
  0x19   : > { %p863_p7 = por %p70_p5, %p69_p4  ;;  %s57_s5 = ssub.s32 %s777_s26, %s1092_s29 }
  0x1a   : > { %p139_p9 = scmp.eq.s32.totalorder %s517_s27, 1  ;;  %p60_p10 = scmp.eq.s32.totalorder %s57_s5, 0 }
  0x1b   : > { %p869_p11 = por %p76_p8, %p75_p6  ;;  %p145_p13 = scmp.eq.s32.totalorder %s518_s28, 1 }
  0x1c   : > { %p873_p12 = por %p139_p9, %p69_p4  ;;  %p565_p2 = scmp.lt.s32.totalorder %s781_s0, 2 }
  0x1d   : > { %s1072_s6 = scalar_select %p869_p11, 1, 0 }
  0x1e   : > { %s1073_s7 = scalar_select %p873_p12, 1, 0 }
  0x1f   : > { %s878_s8 = scalar_select %p60_p10, %s769_s24, %s62_s30  }
  0x20   : > { %p880_p0 = por %p145_p13, %p75_p6  ;;  %s887_s10 = sand.u32 1, %s769_s24  }
  0x21   : > { %s525_s11 = sshll.u32 %s887_s10, 3  ;;  %s545_s12 = sshll.u32 %s777_s26, 7 }
  0x22   : > { %s1074_s9 = scalar_select %p880_p0, 1, 0 }
  0x23   : > { %s896_s15 = scalar_lea.hbm %s1066_s1, %s545_s12  ;;  %s169_s16 = scalar_lea.vmem [#allocation4], %s525_s11 }
  0x24   : > { %s183_s17 = sshll.u32 %s169_s16, 4  ;;  %p904_p3 = pnand %p565_p2, %p863_p7  ;;  %s900_s17 = int_to_ptr.vmem [resolvable:$true] %s183_s17 }
  0x25   : > { %s166_s19 = scalar_lea.sflag [#allocation5], %s887_s10  ;;  %s633_s20 = scalar_lea.hbm %s896_s15, 128 }
  0x26   : > { %p634_p6 = scmp.ne.s32.totalorder %s896_s15, %s633_s20  ;;  %p635_p8 = pneg %p904_p3 }
  0x27   : > { %s638_s28 = scalar_lea.hbm %s1066_s1, 256  ;;  %p639_p7 = scmp.lt.u32.totalorder %s896_s15, %s1066_s1 }
  0x28   : > { %p636_p9 = pnand %p635_p8, %p634_p6  ;;  %p640_p13 = scmp.lt.u32.totalorder %s638_s28, %s633_s20 }
  0x29   : > { %p642_p1 = scmp.lt.u32.totalorder %s633_s20, %s896_s15 }
  0x2a   : > { %p637_p10 = pneg %p636_p9  ;;  %p641_p2 = por %p640_p13, %p639_p7 }
  0x2c   : > { %p643_p4 = por %p642_p1, %p641_p2 }
  0x2e   : > { %p644_p5 = pnand %p643_p4, %p637_p10 }
  0x30   : > { %647 = shalt.err (!%p644_p5)
}
  0x31   : > { %s648_s5 = scalar_lea.vmem %s900_s17, 128  ;;  %s784_s13 = smov [#allocation4]  }
  0x32   : > { %p649_p6 = scmp.ne.s32.totalorder %s900_s17, %s648_s5  ;;  %s653_s14 = sshll.u32 %s784_s13, 4  ;;  %s654_s14 = int_to_ptr.vmem [resolvable:$false] %s653_s14 }
  0x33   : > { %s655_s16 = scalar_lea.vmem %s654_s14, 256  ;;  %p656_p12 = scmp.lt.s32.totalorder %s900_s17, %s654_s14 }
  0x34   : > { %p651_p9 = pnand %p649_p6, %p635_p8  ;;  %p657_p7 = scmp.lt.s32.totalorder %s655_s16, %s648_s5 }
  0x36   : > { %p652_p0 = pneg %p651_p9  ;;  %p658_p13 = por %p657_p7, %p656_p12 }
  0x38   : > { %p659_p1 = pnand %p658_p13, %p652_p0 }
  0x3a   : > { %662 = shalt.err (!%p659_p1)
}
  0x3b   : > { %557 = dma.hbm_to_vmem [thread:$0]  (!%p904_p3), %s896_s15, 128, %s900_s17, %s166_s19  }
  0x3c   : > { %p1076_p4 = scmp.lt.s32.totalorder %s781_s0, 3  ;;  %p1077_p5 = scmp.ge.s32.totalorder %s781_s0, 1 }
  0x3d   : > { %s949_s28 = scalar_lea.hbm %s1067_s2, %s545_s12  ;;  %s194_s30 = scalar_lea.vmem [#allocation7], %s525_s11 }
  0x3e   : > { %p940_p10 = pnand %p1077_p5, %p1076_p4  ;;  %s209_s4 = sshll.u32 %s194_s30, 4  ;;  %s210_s4 = int_to_ptr.vmem [resolvable:$true] %s209_s4 }
  0x3f   : > { %s191_s15 = scalar_lea.sflag [#allocation8], %s887_s10  ;;  %s663_s17 = scalar_lea.hbm %s949_s28, 128 }
  0x40   : > { %s1078_s20 = scalar_select %p940_p10, 1, 0 }
  0x41   : > { %p664_p12 = scmp.ne.s32.totalorder %s949_s28, %s663_s17  ;;  %s668_s12 = scalar_lea.hbm %s1067_s2, 256 }
  0x42   : > { %p669_p6 = scmp.lt.u32.totalorder %s949_s28, %s1067_s2  ;;  %p670_p9 = scmp.lt.u32.totalorder %s668_s12, %s663_s17 }
  0x43   : > { %p666_p0 = pnand %p664_p12, %p635_p8  ;;  %p672_p13 = scmp.lt.u32.totalorder %s663_s17, %s949_s28 }
  0x44   : > { %p671_p7 = por %p670_p9, %p669_p6 }
  0x45   : > { %p667_p2 = pneg %p666_p0 }
  0x46   : > { %p673_p1 = por %p672_p13, %p671_p7 }
  0x48   : > { %p674_p4 = pnand %p673_p1, %p667_p2 }
  0x4a   : > { %677 = shalt.err (!%p674_p4)
}
  0x4b   : > { %s678_s10 = scalar_lea.vmem %s210_s4, 128  ;;  %s785_s11 = smov [#allocation7]  }
  0x4c   : > { %p679_p5 = scmp.ne.s32.totalorder %s210_s4, %s678_s10  ;;  %s683_s16 = sshll.u32 %s785_s11, 4  ;;  %s684_s16 = int_to_ptr.vmem [resolvable:$false] %s683_s16 }
  0x4d   : > { %s685_s21 = scalar_lea.vmem %s684_s16, 256  ;;  %p686_p11 = scmp.lt.s32.totalorder %s210_s4, %s684_s16 }
  0x4e   : > { %p681_p12 = pnand %p679_p5, %p635_p8  ;;  %p687_p10 = scmp.lt.s32.totalorder %s685_s21, %s678_s10 }
  0x50   : > { %p682_p0 = pneg %p681_p12  ;;  %p688_p6 = por %p687_p10, %p686_p11 }
  0x52   : > { %p689_p9 = pnand %p688_p6, %p682_p0 }
  0x54   : > { %692 = shalt.err (!%p689_p9)
}
  0x55   : > { %560 = dma.hbm_to_vmem [thread:$0]  (!%p904_p3), %s949_s28, 128, %s210_s4, %s191_s15  }
  0x56   : > { %p1079_p2 = scmp.ne.s32.totalorder %s1078_s20, 0 }
  0x57   : > { %s976_s27 = sand.u32 (!%p1079_p2), 1, %s765_s23   ;;  %p1080_p8 = scmp.ne.s32.totalorder (!%p1079_p2), %s1072_s6, 0 }
  0x58   : > { %218 = sbr.rel (%p1079_p2) target bundleno = 201 (0xc9), region = 28  ;;  %s534_s30 = sshll.u32 (!%p1079_p2), %s976_s27, 3 }
  0x59   : > { %s221_s17 = scalar_lea.sflag (!%p1079_p2), [#allocation5], %s976_s27  ;;  %s224_s19 = scalar_lea.vmem (!%p1079_p2), [#allocation4], %s534_s30 }
  0x5f   : > { %748 = dma.done.wait (%p1080_p8), %s221_s17, 128  }
  0x60   : > { %750 = vsyncadd (%p1080_p8), %s221_s17, 4294967168  ;;  %s230_s18 = scalar_lea.sflag [#allocation8], %s976_s27  ;;  %s985_s28 = scalar_lea.vmem [#allocation7], %s534_s30 }
  0x61   : > { %752 = dma.done.wait (%p1080_p8), %s230_s18, 128  }
  0x62   : > { %754 = vsyncadd (%p1080_p8), %s230_s18, 4294967168  ;;  %s537_s20 = sshll.u32 %s773_s25, 7  ;;  %s536_s4 = sshll.u32 %s976_s27, 1  ;;  %v274_v0 = vlaneseq  ;;  %v786_v2 = vmov 0.0  }
  0x63   : > { %s280_s15 = sld [smem:[#allocation3 + %s537_s20]]  ;;  %s281_s5 = sadd.s32 1, %s537_s20 }
  0x64   : > { %s993_s12 = sld [smem:[#allocation3 + %s281_s5]]  ;;  %vm996_vm0 = vcmp.lt.s32.totalorder %v274_v0, 256  ;;  %s1000_s13 = scalar_lea.vmem [#allocation9], %s536_s4 }
  0x65   : > { %278 = vst.msk [vmem:[%s1000_s13] sm:$0x3] %vm996_vm0, %v786_v2 }
  0x69   : > { %p538_p11 = scmp.ne.s32.totalorder %s280_s15, 1 }
  0x6a   : > { %v287_v3 = vld [vmem:[%s224_s19] sm:$0xff] (!%p538_p11)  ;;  %vm292_vm1 = vcmask (!%p538_p11), 1043456   ;;  %v787_v22 = vmov (!%p538_p11), 1966171168   ;;  %v321_v25 = vshrl.u32 (!%p538_p11), %v274_v0, 7 }
  0x6b   : > { %286 = sbr.rel (%p538_p11) target bundleno = 148 (0x94), region = 44  ;;  %v288_v4 = vmul.f32 (!%p538_p11), %v287_v3, %v287_v3  ;;  %v318_v23 = vunpack.c.l.s4 (!%p538_p11), %v787_v22 }
  0x6c   : > { %v307_v33 = vld [vmem:[%s1000_s13] sm:$0x3] (!%p538_p11) }
  0x6d   : > { %v290_v5 = vcombine.high (!%p538_p11), %v288_v4, %v288_v4  ;;  %v293_v6 = vsel (!%p538_p11), %vm292_vm1, %v288_v4, 0.0  ;;  %v319_v24 = vunpack.c.0.s8 (!%p538_p11), %v318_v23 }
  0x6e   : > { %v294_v7 = vrot.slane (!%p538_p11), %v293_v6, 4 }
  0x6f   : > { %v300_v8 = vsel (!%p538_p11), %vm292_vm1, %v290_v5, 0.0  ;;  %v322_v30 = vsub.s32 (!%p538_p11), %v319_v24, %v321_v25 }
  0x70   : > { %v295_v9 = vadd.f32 (!%p538_p11), %v294_v7, %v293_v6  ;;  %v301_v10 = vrot.slane (!%p538_p11), %v300_v8, 4 }
  0x72   : > { %v296_v11 = vrot.slane %v295_v9, 2  ;;  %v302_v12 = vadd.f32 %v301_v10, %v300_v8 }
  0x74   : > { %v297_v13 = vadd.f32 %v296_v11, %v295_v9  ;;  %v303_v14 = vrot.slane %v302_v12, 2 }
  0x76   : > { %v298_v15 = vrot.slane %v297_v13, 1  ;;  %v304_v16 = vadd.f32 %v303_v14, %v302_v12 }
  0x78   : > { %v299_v17 = vadd.f32 %v298_v15, %v297_v13  ;;  %v305_v18 = vrot.slane %v304_v16, 1 }
  0x7a   : > { %v306_v19 = vadd.f32 %v305_v18, %v304_v16  ;;  %v308_v20 = vmax.f32 %v299_v17, 1e-24 }
  0x7c   : > { %v309_v21 = vmax.f32 %v306_v19, 1e-24  ;;  %619 = vrcp.f32 %v308_v20 }
  0x7e   : > { %621 = vrcp.f32 %v309_v21 }
  0x86   : > { %v620_v26 = vpop.eup %619 }
  0x87   : > { %v311_v27 = vmul.f32 %v620_v26, %v299_v17 }
  0x88   : > { %v622_v28 = vpop.eup %621 }
  0x89   : > { %v313_v29 = vmul.f32 %v622_v28, %v306_v19 }
  0x8b   : > { %v316_v31 = vcombine.low %v311_v27, %v313_v29 }
  0x8d   : > { %v323_v32 = vrot.slane %v316_v31, %v322_v30 }
  0x8f   : > { %v330_v34 = vrot.slane %v323_v32, %v322_v30 }
  0x91   : > { %v332_v35 = vadd.f32 %v330_v34, %v307_v33 }
  0x93   : > { %337 = vst.msk [vmem:[%s1000_s13] sm:$0x3] %vm996_vm0, %v332_v35 }
  0x94 PF: > { %p539_p3 = scmp.ne.s32.totalorder %s993_s12, 1 }
  0x95   : > { %v342_v36 = vld [vmem:[%s985_s28] sm:$0xff] (!%p539_p3)  ;;  %vm348_vm2 = vcmask (!%p539_p3), 1043456   ;;  %v788_v46 = vmov (!%p539_p3), 1966171168   ;;  %v370_v53 = vshrl.u32 (!%p539_p3), %v274_v0, 7 }
  0x96   : > { %341 = sbr.rel (%p539_p3) target bundleno = 176 (0xb0), region = 48  ;;  %v344_v37 = vmul.f32 (!%p539_p3), %v342_v36, %v342_v36  ;;  %v367_v47 = vunpack.c.l.s4 (!%p539_p3), %v788_v46 }
  0x98   : > { %v346_v38 = vcombine.high (!%p539_p3), %v344_v37, %v344_v37  ;;  %v349_v39 = vsel (!%p539_p3), %vm348_vm2, %v344_v37, 0.0  ;;  %v368_v52 = vunpack.c.0.s8 (!%p539_p3), %v367_v47 }
  0x99   : > { %v350_v40 = vrot.slane (!%p539_p3), %v349_v39, 4 }
  0x9a   : > { %v356_v41 = vsel (!%p539_p3), %vm348_vm2, %v346_v38, 0.0  ;;  %v371_v57 = vsub.s32 (!%p539_p3), %v368_v52, %v370_v53  ;;  %v343_v60 = vld [vmem:[%s1000_s13] sm:$0x3] (!%p539_p3) }
  0x9b   : > { %v351_v42 = vadd.f32 (!%p539_p3), %v350_v40, %v349_v39  ;;  %v357_v43 = vrot.slane (!%p539_p3), %v356_v41, 4 }
  0x9d   : > { %v352_v44 = vrot.slane %v351_v42, 2  ;;  %v358_v45 = vadd.f32 %v357_v43, %v356_v41 }
  0x9f   : > { %v353_v48 = vadd.f32 %v352_v44, %v351_v42  ;;  %v359_v49 = vrot.slane %v358_v45, 2 }
  0xa1   : > { %v354_v50 = vrot.slane %v353_v48, 1  ;;  %v360_v51 = vadd.f32 %v359_v49, %v358_v45 }
  0xa3   : > { %v355_v54 = vadd.f32 %v354_v50, %v353_v48  ;;  %v361_v55 = vrot.slane %v360_v51, 1 }
  0xa5   : > { %v362_v56 = vadd.f32 %v361_v55, %v360_v51 }
  0xa7   : > { %v365_v58 = vcombine.low %v355_v54, %v362_v56 }
  0xa9   : > { %v372_v59 = vrot.slane %v365_v58, %v371_v57 }
  0xab   : > { %v379_v61 = vrot.slane %v372_v59, %v371_v57 }
  0xad   : > { %v381_v62 = vadd.f32 %v379_v61, %v343_v60 }
  0xaf   : > { %386 = vst.msk [vmem:[%s1000_s13] sm:$0x3] %vm996_vm0, %v381_v62 }
  0xb0 PF: > { %s547_s6 = sshll.u32 %s773_s25, 5  ;;  %s404_s16 = sshll.u32 %s1000_s13, 4  ;;  %s405_s16 = int_to_ptr.vmem [resolvable:$true] %s404_s16 }
  0xb1   : > { %s1021_s11 = scalar_lea.hbm %s1068_s3, %s547_s6  ;;  %s388_s21 = scalar_lea.sflag [#allocation6], %s976_s27 }
  0xb2   : > { %s693_s30 = scalar_lea.vmem %s405_s16, 32  ;;  %p1083_p7 = scmp.ne.s32.totalorder %s1073_s7, 0 }
  0xb3   : > { %p694_p10 = scmp.ne.s32.totalorder %s405_s16, %s693_s30  ;;  %s789_s17 = smov [#allocation9]  }
  0xb4   : > { %s697_s19 = sshll.u32 %s789_s17, 4  ;;  %s698_s19 = int_to_ptr.vmem [resolvable:$false] %s697_s19 }
  0xb5   : > { %p695_p13 = pnand %p694_p10, %p1083_p7  ;;  %s699_s18 = scalar_lea.vmem %s698_s19, 64 }
  0xb6   : > { %p700_p4 = scmp.lt.s32.totalorder %s405_s16, %s698_s19  ;;  %p701_p5 = scmp.lt.s32.totalorder %s699_s18, %s693_s30 }
  0xb7   : > { %p696_p1 = pneg %p695_p13 }
  0xb8   : > { %p702_p12 = por %p701_p5, %p700_p4 }
  0xba   : > { %p703_p0 = pnand %p702_p12, %p696_p1 }
  0xbc   : > { %706 = shalt.err (!%p703_p0)
}
  0xbd   : > { %s707_s25 = scalar_lea.hbm %s1021_s11, 32  ;;  %s711_s20 = scalar_lea.hbm %s1068_s3, 64 }
  0xbe   : > { %p708_p6 = scmp.ne.s32.totalorder %s1021_s11, %s707_s25  ;;  %p712_p8 = scmp.lt.u32.totalorder %s1021_s11, %s1068_s3 }
  0xbf   : > { %p713_p11 = scmp.lt.u32.totalorder %s711_s20, %s707_s25  ;;  %p715_p10 = scmp.lt.u32.totalorder %s707_s25, %s1021_s11 }
  0xc0   : > { %p709_p9 = pnand %p708_p6, %p1083_p7 }
  0xc1   : > { %p714_p3 = por %p713_p11, %p712_p8 }
  0xc2   : > { %p710_p2 = pneg %p709_p9 }
  0xc3   : > { %p716_p13 = por %p715_p10, %p714_p3 }
  0xc5   : > { %p717_p1 = pnand %p716_p13, %p710_p2 }
  0xc7   : > { %720 = shalt.err (!%p717_p1)
}
  0xc8   : > { %552 = dma.vmem_to_hbm [thread:$0]  (%p1083_p7), %s405_s16, 32, %s1021_s11, %s388_s21  }
  0xc9 PF: > { %s416_s5 = sand.u32 1, %s761_s22   ;;  %p1084_p4 = scmp.ne.s32.totalorder %s1074_s9, 0 }
  0xca   : > { %p1085_p5 = scmp.ge.s32.totalorder %s781_s0, 2  ;;  %s417_s12 = scalar_lea.sflag [#allocation6], %s416_s5 }
  0xcc   : > { %p562_p12 = pnand %p1085_p5, %p1084_p4 }
  0xce   : > { %756 = dma.done.wait (!%p562_p12), %s417_s12, 32  }
  0xcf   : > { %758 = vsyncadd (!%p562_p12), %s417_s12, 4294967264  ;;  %s26_s0 = sadd.s32 1, %s781_s0   ;;  %s1086_s22 = smov %s765_s23 }
  0xd0   : > { %p23_p0 = scmp.ge.s32.totalorder %s26_s0, 4   ;;  %s1087_s23 = smov %s769_s24 }
  0xd1   : > { %s1088_s24 = smov %s878_s8  ;;  %s1089_s25 = smov %s777_s26 }
  0xd2   : > { %s1090_s26 = smov %s1092_s29  ;;  %25 = sbr.rel (!%p23_p0) target bundleno = 20 (0x14), region = 98 }
  0xd9   :  { %422 = vsyncpa [#allocation5], 1 }
  0xda   :  { %424 = vsyncpa [#allocation5 + $0x1], 1 }
  0xdb   :  { %425 = vsyncpa [#allocation8], 1 }
  0xdc   :  { %427 = vsyncpa [#allocation8 + $0x1], 1 }
  0xdd   :  { %428 = vsyncpa [#allocation6], 1 }
  0xde   :  { %430 = vsyncpa [#allocation6 + $0x1], 1 }

</bundles_post_ra>
